<compile_context>
chip_gen: v6e
topology: v6e:2x2x1
jax: 0.10.0
libtpu: 0.0.40
codegen_flags: <defaults>
</compile_context>

<pallas_src>
import functools
import math

import jax
import jax.numpy as jnp
from jax.experimental import pallas as pl
from jax.experimental.pallas import tpu as pltpu


def _round_up(x, m):
    return ((x + m - 1) // m) * m


def _vmem_capacity_bytes(default=64 << 20):
    """Best-effort query of per-core VMEM capacity; safe fallback = 64 MiB."""
    try:
        info = pltpu.get_tpu_info()
        for name in ("vmem_capacity_bytes", "vmem_bytes", "vmem_size_bytes"):
            v = getattr(info, name, None)
            if v:
                return int(v)
    except Exception:
        pass
    return default


def _gelu_exact_f32(x):
    """Exact (erf-based) GELU, matching torch.nn.functional.gelu's default.

    erf via the Abramowitz & Stegun 7.1.26 polynomial (|error| < 1.5e-7).
    The divide uses pl.reciprocal(approx=True) so it lands in the EUP slot
    (free alongside the exp) instead of the vector ALU.
    """
    a1, a2, a3, a4, a5 = (0.254829592, -0.284496736, 1.421413741,
                          -1.453152027, 1.061405429)
    p = 0.3275911
    z = x * 0.7071067811865476              # x / sqrt(2)
    az = jnp.abs(z)
    t = pl.reciprocal(1.0 + p * az, approx=True)       # EUP, not VALU
    poly = ((((a5 * t + a4) * t + a3) * t + a2) * t + a1) * t
    erf_abs = 1.0 - poly * jnp.exp(-az * az)           # exp -> EUP
    erf = jnp.where(z >= 0, erf_abs, -erf_abs)
    return 0.5 * x * (1.0 + erf)


def _gelu_tanh_f32(x):
    """tanh-approximate GELU: ~half the VALU ops (tanh goes to the EUP).
    Cheaper on VALU-bound chips (v5e); slightly different numerics."""
    c = 0.7978845608028654                  # sqrt(2/pi)
    return 0.5 * x * (1.0 + jnp.tanh(c * (x + 0.044715 * x * x * x)))


def _ffn_kernel(x_ref, w1_ref, b1_ref, w2_ref, b2_ref, o_ref, acc_ref,
                *, gelu_fn):
    """One (row-tile, hidden-tile) grid step.

    x_ref:  (tm, D)  compute dtype (bf16)
    w1_ref: (D, tf)  bf16    b1_ref: (1, tf) f32
    w2_ref: (tf, D)  bf16    b2_ref: (1, D)  f32
    o_ref:  (tm, D)  output dtype
    acc_ref:(tm, D)  f32 accumulator, resident across the f axis
    """
    f = pl.program_id(1)

    @pl.when(f == 0)
    def _():
        acc_ref[...] = jnp.zeros_like(acc_ref)

    # linear1 column slab: (tm, D) @ (D, tf) -> (tm, tf), MXU, f32 accumulate.
    h = jnp.dot(x_ref[...], w1_ref[...], preferred_element_type=jnp.float32)
    h = h + b1_ref[...]                     # f32 bias add
    h = gelu_fn(h)                          # GELU in f32

    # Dropout: identity (inference mode).  See TODO(synk) at top of file.

    # linear2 partial product: (tm, tf) @ (tf, D) -> accumulate into (tm, D).
    acc_ref[...] += jnp.dot(h.astype(w2_ref.dtype), w2_ref[...],
                            preferred_element_type=jnp.float32)

    @pl.when(f == pl.num_programs(1) - 1)
    def _():
        o_ref[...] = (acc_ref[...] + b2_ref[...]).astype(o_ref.dtype)


def _pick_tm(M, block_m):
    """Row tile: multiple of 8 (sublane), and >=2 grid steps when M > 8 so
    both v7x TensorCores get work on the 'parallel' axis."""
    if M > block_m:
        return block_m
    if M > 8:
        return min(_round_up(pl.cdiv(M, 2), 8), _round_up(M, 8))
    return M


def _pick_tf(F, block_f):
    """Hidden tile: either the full F, or a multiple of 128 that divides F
    (so no padded hidden columns ever enter the accumulator)."""
    if F <= block_f or F % 128 != 0:
        return F
    for cand in range(block_f - (block_f % 128), 127, -128):
        if cand > 0 and F % cand == 0:
            return cand
    return F


def feed_forward(x, params, *, block_m=256, block_f=2048,
                 compute_dtype=jnp.bfloat16, gelu_approximate=False):
    """x: (..., d_model); params: w1 (D,F), b1 (1,F), w2 (F,D), b2 (1,D).

    block_m: row tile (v6e can afford 512 for large M; keep <=256 on v5e/v7x).
    block_f: hidden tile (multiple of 128); caps weight+hidden VMEM at O(D*tf).
    """
    orig_shape = x.shape
    D = orig_shape[-1]
    F_ = params["w1"].shape[1]
    M = int(math.prod(orig_shape[:-1]))

    # Flatten leading dims -> (M, D): lane-dense tiles, one parallel grid axis.
    x2 = x.reshape(M, D).astype(compute_dtype)
    w1 = params["w1"].astype(compute_dtype)
    w2 = params["w2"].astype(compute_dtype)
    b1 = params["b1"].astype(jnp.float32).reshape(1, F_)
    b2 = params["b2"].astype(jnp.float32).reshape(1, D)

    tm = _pick_tm(M, block_m)
    tf = _pick_tf(F_, block_f)
    grid = (pl.cdiv(M, tm), pl.cdiv(F_, tf))

    cbytes = jnp.dtype(compute_dtype).itemsize
    obytes = jnp.dtype(x.dtype).itemsize
    # Per-step VMEM footprint (double-buffered pipeline buffers + scratch
    # + transient hidden activation), with 1.5x slack for layout padding.
    vmem_est = (2 * tm * D * cbytes          # x tile
                + 2 * tm * D * obytes        # out tile
                + 2 * D * tf * cbytes        # w1 column tile
                + 2 * 8 * tf * 4             # b1 tile (sublane-padded)
                + 2 * tf * D * cbytes        # w2 row tile
                + 2 * 8 * D * 4              # b2 tile
                + tm * D * 4                 # f32 accumulator scratch
                + tm * tf * (4 + cbytes))    # f32 hidden + bf16 copy
    vmem_cap = _vmem_capacity_bytes()
    vmem_limit = int(min(max(int(1.5 * vmem_est), 8 << 20),
                         int(0.85 * vmem_cap)))

    cost = pl.CostEstimate(
        flops=int(4 * M * D * F_),                       # two matmuls
        transcendentals=int(2 * M * F_),                 # exp + rcp per GELU
        bytes_accessed=int(M * D * cbytes + M * D * obytes
                           + 2 * D * F_ * cbytes + (D + F_) * 4),
    )

    gelu_fn = _gelu_tanh_f32 if gelu_approximate else _gelu_exact_f32
    kernel = functools.partial(_ffn_kernel, gelu_fn=gelu_fn)

    out = pl.pallas_call(
        kernel,
        out_shape=jax.ShapeDtypeStruct((M, D), x.dtype),
        grid_spec=pltpu.PrefetchScalarGridSpec(
            num_scalar_prefetch=0,
            grid=grid,
            in_specs=[
                pl.BlockSpec((tm, D), lambda i, f: (i, 0)),   # x (const over f)
                pl.BlockSpec((D, tf), lambda i, f: (0, f)),   # w1 column slab
                pl.BlockSpec((1, tf), lambda i, f: (0, f)),   # b1
                pl.BlockSpec((tf, D), lambda i, f: (f, 0)),   # w2 row slab
                pl.BlockSpec((1, D), lambda i, f: (0, 0)),    # b2 (constant)
            ],
            out_specs=pl.BlockSpec((tm, D), lambda i, f: (i, 0)),
            scratch_shapes=[pltpu.VMEM((tm, D), jnp.float32)],
        ),
        compiler_params=pltpu.CompilerParams(
            dimension_semantics=("parallel", "arbitrary"),
            vmem_limit_bytes=vmem_limit,
        ),
        cost_estimate=cost,
    )(x2, w1, b1, w2, b2)

    return out.reshape(orig_shape)


def init_params(key, d_model, d_ff):
    """xavier_uniform weights (stored as (in, out)), zero biases."""
    k1, k2 = jax.random.split(key)
    bound = math.sqrt(6.0 / (d_model + d_ff))
    w1 = jax.random.uniform(k1, (d_model, d_ff), jnp.float32,
                            minval=-bound, maxval=bound)
    w2 = jax.random.uniform(k2, (d_ff, d_model), jnp.float32,
                            minval=-bound, maxval=bound)
    return {
        "w1": w1, "b1": jnp.zeros((1, d_ff), jnp.float32),
        "w2": w2, "b2": jnp.zeros((1, d_model), jnp.float32),
    }


def _reference(x, params, compute_dtype=jnp.bfloat16, approximate=False):
    """Pure-JAX reference mirroring the PyTorch forward (eval mode), using the
    same bf16-rounded operands as the kernel so the comparison is apples-to-apples."""
    xd = x.astype(compute_dtype).astype(jnp.float32)
    w1 = params["w1"].astype(compute_dtype).astype(jnp.float32)
    w2 = params["w2"].astype(compute_dtype).astype(jnp.float32)
    h = xd @ w1 + params["b1"]
    h = jax.nn.gelu(h, approximate=approximate)   # exact GELU = F.gelu default
    h = h.astype(compute_dtype).astype(jnp.float32)
    y = h @ w2 + params["b2"]
    return y.astype(x.dtype)


def _check(x, params, **kw):
    out = jax.block_until_ready(feed_forward(x, params, **kw))
    ref = _reference(x, params, approximate=kw.get("gelu_approximate", False))
    assert out.shape == x.shape
    # bf16 matmuls + approx EUP reciprocal in the erf polynomial -> ~1e-2 tol.
    assert jnp.allclose(out, ref, atol=1e-2, rtol=1e-2), (
        float(jnp.max(jnp.abs(out - ref))))
    return out


if __name__ == "__main__":
    key = jax.random.PRNGKey(0)
    k_x, k_p, k_x2, k_p2 = jax.random.split(key, 4)

    # Case 1: small module config; single hidden tile, 2 row tiles.
    B, S, D_MODEL, D_FF = 2, 8, 32, 128
    x = jax.random.normal(k_x, (B, S, D_MODEL), jnp.float32)
    params = init_params(k_p, D_MODEL, D_FF)
    _check(x, params)

    # Case 2: force the F-tiled accumulator path (2 hidden tiles, 2 row tiles).
    D_FF2 = 256
    x2 = jax.random.normal(k_x2, (B, S, D_MODEL), jnp.float32)
    params2 = init_params(k_p2, D_MODEL, D_FF2)
    _check(x2, params2, block_f=128)

    print("KERNEL_OK")
</pallas_src>

<mosaic_0001>
module attributes {stable_mosaic.version = 11 : i64} {
  func.func @_ffn_kernel(%arg0: i32, %arg1: i32, %arg2: memref<8x32xbf16, #tpu.memory_space<vmem>>, %arg3: memref<32x128xbf16, #tpu.memory_space<vmem>>, %arg4: memref<1x128xf32, #tpu.memory_space<vmem>>, %arg5: memref<128x32xbf16, #tpu.memory_space<vmem>>, %arg6: memref<1x32xf32, #tpu.memory_space<vmem>>, %arg7: memref<8x32xf32, #tpu.memory_space<vmem>>, %arg8: memref<8x32xf32, #tpu.memory_space<vmem>>) attributes {dimension_semantics = [#tpu.dimension_semantics<parallel>, #tpu.dimension_semantics<arbitrary>], iteration_bounds = array<i64: 2, 1>, scalar_prefetch = 0 : i64, scratch_operands = 1 : i64, tpu.core_type = #tpu.core_type<tc>, window_params = [{transform_indices = @transform_0, window_bounds = array<i64: 8, 32>}, {transform_indices = @transform_1, window_bounds = array<i64: 32, 128>}, {transform_indices = @transform_2, window_bounds = array<i64: 1, 128>}, {transform_indices = @transform_3, window_bounds = array<i64: 128, 32>}, {pipeline_mode = #tpu.pipeline_mode<synchronous>, transform_indices = @transform_4, window_bounds = array<i64: 1, 32>}, {transform_indices = @transform_5, window_bounds = array<i64: 8, 32>}]} {
    %c0_i32 = arith.constant 0 : i32
    %0 = arith.cmpi eq, %arg1, %c0_i32 : i32
    %1 = arith.extui %0 : i1 to i32
    %c0_i32_0 = arith.constant 0 : i32
    %2 = arith.cmpi ne, %1, %c0_i32_0 : i32
    scf.if %2 {
      %cst_29 = arith.constant 0.000000e+00 : f32
      %57 = vector.broadcast %cst_29 : f32 to vector<8x32xf32>
      %c0_30 = arith.constant 0 : index
      %c0_31 = arith.constant 0 : index
      %58 = vector.load %arg8[%c0_30, %c0_31] : memref<8x32xf32, #tpu.memory_space<vmem>>, vector<8x32xf32>
      tpu.vector_store %arg8[%c0_30, %c0_31], %57 {strides = array<i32>} : memref<8x32xf32, #tpu.memory_space<vmem>>, vector<8x32xf32>,
    } else {
    }
    %c0 = arith.constant 0 : index
    %c0_1 = arith.constant 0 : index
    %3 = vector.load %arg2[%c0, %c0_1] : memref<8x32xbf16, #tpu.memory_space<vmem>>, vector<8x32xbf16>
    %c0_2 = arith.constant 0 : index
    %c0_3 = arith.constant 0 : index
    %4 = vector.load %arg3[%c0_2, %c0_3] : memref<32x128xbf16, #tpu.memory_space<vmem>>, vector<32x128xbf16>
    %cst = arith.constant dense<0.000000e+00> : vector<8x128xf32>
    %5 = tpu.matmul %3, %4, %cst {dimension_numbers = #tpu.dot_dimension_numbers<[1], [0], [0], [1], [0, 0, 1, 1], [], []>} : vector<8x32xbf16>, vector<32x128xbf16>, vector<8x128xf32> -> vector<8x128xf32>
    %c0_4 = arith.constant 0 : index
    %c0_5 = arith.constant 0 : index
    %6 = vector.load %arg4[%c0_4, %c0_5] : memref<1x128xf32, #tpu.memory_space<vmem>>, vector<1x128xf32>
    %7 = vector.broadcast %6 : vector<1x128xf32> to vector<8x128xf32>
    %8 = arith.addf %5, %7 : vector<8x128xf32>
    %cst_6 = arith.constant 0.707106769 : f32
    %9 = vector.broadcast %cst_6 : f32 to vector<8x128xf32>
    %10 = arith.mulf %8, %9 : vector<8x128xf32>
    %11 = math.absf %10 : vector<8x128xf32>
    %cst_7 = arith.constant 0.327591091 : f32
    %12 = vector.broadcast %cst_7 : f32 to vector<8x128xf32>
    %13 = arith.mulf %12, %11 : vector<8x128xf32>
    %cst_8 = arith.constant 1.000000e+00 : f32
    %14 = vector.broadcast %cst_8 : f32 to vector<8x128xf32>
    %15 = arith.addf %14, %13 : vector<8x128xf32>
    %16 = tpu.reciprocal %15 {approx = true} : vector<8x128xf32> -> vector<8x128xf32>
    %cst_9 = arith.constant 1.06140542 : f32
    %17 = vector.broadcast %cst_9 : f32 to vector<8x128xf32>
    %18 = arith.mulf %17, %16 : vector<8x128xf32>
    %cst_10 = arith.constant -1.45315206 : f32
    %19 = vector.broadcast %cst_10 : f32 to vector<8x128xf32>
    %20 = arith.addf %18, %19 : vector<8x128xf32>
    %21 = arith.mulf %20, %16 : vector<8x128xf32>
    %cst_11 = arith.constant 1.42141378 : f32
    %22 = vector.broadcast %cst_11 : f32 to vector<8x128xf32>
    %23 = arith.addf %21, %22 : vector<8x128xf32>
    %24 = arith.mulf %23, %16 : vector<8x128xf32>
    %cst_12 = arith.constant -0.284496725 : f32
    %25 = vector.broadcast %cst_12 : f32 to vector<8x128xf32>
    %26 = arith.addf %24, %25 : vector<8x128xf32>
    %27 = arith.mulf %26, %16 : vector<8x128xf32>
    %cst_13 = arith.constant 0.254829586 : f32
    %28 = vector.broadcast %cst_13 : f32 to vector<8x128xf32>
    %29 = arith.addf %27, %28 : vector<8x128xf32>
    %30 = arith.mulf %29, %16 : vector<8x128xf32>
    %cst_14 = arith.constant 0.000000e+00 : f32
    %31 = vector.broadcast %cst_14 : f32 to vector<8x128xf32>
    %32 = arith.subf %31, %11 : vector<8x128xf32>
    %33 = arith.mulf %32, %11 : vector<8x128xf32>
    %34 = math.exp %33 : vector<8x128xf32>
    %35 = arith.mulf %30, %34 : vector<8x128xf32>
    %cst_15 = arith.constant 1.000000e+00 : f32
    %36 = vector.broadcast %cst_15 : f32 to vector<8x128xf32>
    %37 = arith.subf %36, %35 : vector<8x128xf32>
    %cst_16 = arith.constant 0.000000e+00 : f32
    %38 = vector.broadcast %cst_16 : f32 to vector<8x128xf32>
    %39 = arith.cmpf oge, %10, %38 : vector<8x128xf32>
    %cst_17 = arith.constant 0.000000e+00 : f32
    %40 = vector.broadcast %cst_17 : f32 to vector<8x128xf32>
    %41 = arith.subf %40, %37 : vector<8x128xf32>
    %42 = arith.select %39, %37, %41 : vector<8x128xi1>, vector<8x128xf32>
    %cst_18 = arith.constant 5.000000e-01 : f32
    %43 = vector.broadcast %cst_18 : f32 to vector<8x128xf32>
    %44 = arith.mulf %43, %8 : vector<8x128xf32>
    %cst_19 = arith.constant 1.000000e+00 : f32
    %45 = vector.broadcast %cst_19 : f32 to vector<8x128xf32>
    %46 = arith.addf %45, %42 : vector<8x128xf32>
    %47 = arith.mulf %44, %46 : vector<8x128xf32>
    %c0_20 = arith.constant 0 : index
    %c0_21 = arith.constant 0 : index
    %48 = vector.load %arg8[%c0_20, %c0_21] : memref<8x32xf32, #tpu.memory_space<vmem>>, vector<8x32xf32>
    %49 = arith.truncf %47 : vector<8x128xf32> to vector<8x128xbf16>
    %c0_22 = arith.constant 0 : index
    %c0_23 = arith.constant 0 : index
    %50 = vector.load %arg5[%c0_22, %c0_23] : memref<128x32xbf16, #tpu.memory_space<vmem>>, vector<128x32xbf16>
    %cst_24 = arith.constant dense<0.000000e+00> : vector<8x32xf32>
    %51 = tpu.matmul %49, %50, %cst_24 {dimension_numbers = #tpu.dot_dimension_numbers<[1], [0], [0], [1], [0, 0, 1, 1], [], []>} : vector<8x128xbf16>, vector<128x32xbf16>, vector<8x32xf32> -> vector<8x32xf32>
    %52 = arith.addf %48, %51 : vector<8x32xf32>
    %c0_25 = arith.constant 0 : index
    %c0_26 = arith.constant 0 : index
    %53 = vector.load %arg8[%c0_25, %c0_26] : memref<8x32xf32, #tpu.memory_space<vmem>>, vector<8x32xf32>
    tpu.vector_store %arg8[%c0_25, %c0_26], %52 {strides = array<i32>} : memref<8x32xf32, #tpu.memory_space<vmem>>, vector<8x32xf32>,
    %c0_i32_27 = arith.constant 0 : i32
    %54 = arith.cmpi eq, %arg1, %c0_i32_27 : i32
    %55 = arith.extui %54 : i1 to i32
    %c0_i32_28 = arith.constant 0 : i32
    %56 = arith.cmpi ne, %55, %c0_i32_28 : i32
    scf.if %56 {
      %c0_29 = arith.constant 0 : index
      %c0_30 = arith.constant 0 : index
      %57 = vector.load %arg8[%c0_29, %c0_30] : memref<8x32xf32, #tpu.memory_space<vmem>>, vector<8x32xf32>
      %c0_31 = arith.constant 0 : index
      %c0_32 = arith.constant 0 : index
      %58 = vector.load %arg6[%c0_31, %c0_32] : memref<1x32xf32, #tpu.memory_space<vmem>>, vector<1x32xf32>
      %59 = vector.broadcast %58 : vector<1x32xf32> to vector<8x32xf32>
      %60 = arith.addf %57, %59 : vector<8x32xf32>
      %c0_33 = arith.constant 0 : index
      %c0_34 = arith.constant 0 : index
      %61 = vector.load %arg7[%c0_33, %c0_34] : memref<8x32xf32, #tpu.memory_space<vmem>>, vector<8x32xf32>
      tpu.vector_store %arg7[%c0_33, %c0_34], %60 {strides = array<i32>} : memref<8x32xf32, #tpu.memory_space<vmem>>, vector<8x32xf32>,
    } else {
    }
    return
  }
  func.func @transform_0(%arg0: i32, %arg1: i32) -> (i32, i32) {
    %c0_i32 = arith.constant 0 : i32
    %c0_i32_0 = arith.constant 0 : i32
    return %arg0, %c0_i32 : i32, i32
  }
  func.func @transform_1(%arg0: i32, %arg1: i32) -> (i32, i32) {
    %c0_i32 = arith.constant 0 : i32
    %c0_i32_0 = arith.constant 0 : i32
    return %c0_i32, %arg1 : i32, i32
  }
  func.func @transform_2(%arg0: i32, %arg1: i32) -> (i32, i32) {
    %c0_i32 = arith.constant 0 : i32
    %c0_i32_0 = arith.constant 0 : i32
    return %c0_i32, %arg1 : i32, i32
  }
  func.func @transform_3(%arg0: i32, %arg1: i32) -> (i32, i32) {
    %c0_i32 = arith.constant 0 : i32
    %c0_i32_0 = arith.constant 0 : i32
    return %arg1, %c0_i32 : i32, i32
  }
  func.func @transform_4(%arg0: i32, %arg1: i32) -> (i32, i32) {
    %c0_i32 = arith.constant 0 : i32
    %c0_i32_0 = arith.constant 0 : i32
    %c0_i32_1 = arith.constant 0 : i32
    return %c0_i32, %c0_i32_0 : i32, i32
  }
  func.func @transform_5(%arg0: i32, %arg1: i32) -> (i32, i32) {
    %c0_i32 = arith.constant 0 : i32
    %c0_i32_0 = arith.constant 0 : i32
    return %arg0, %c0_i32 : i32, i32
  }
}

</mosaic_0001>

<bundles_post_ra>
// kernel: tpu_custom_call.1
= control target key start
LH: loop header
LB: loop body
LE: loop exit
PB: predicated region body
PF: predicated region fallthrough
CT: control target
= control target key end

     0   :  { %10 = vsyncpa [#allocation4], 0  ;;  %s1018_s0 = inlined_call_operand.vmem [shape: bf16[16,32], index: 0, kind: input, shape index: {}]   ;;  %s1019_s1 = inlined_call_operand.vmem [shape: bf16[32,128], index: 1, kind: input, shape index: {}]   ;;  %s1020_s2 = inlined_call_operand.vmem [shape: f32[1,128], index: 2, kind: input, shape index: {}]   ;;  %s1021_s3 = inlined_call_operand.vmem [shape: bf16[128,32], index: 3, kind: input, shape index: {}]   ;;  %s1022_s4 = inlined_call_operand.vmem [shape: f32[1,32], index: 4, kind: input, shape index: {}]   ;;  %s1023_s5 = inlined_call_operand.hbm [shape: f32[16,32], index: 5, kind: output, shape index: {}]  }
   0x1   :  { %12 = vsyncpa [#allocation4 + $0x1], 0  ;;  %s879_s18 = smov 0   ;;  %s881_s19 = smov 0  }
   0x2   :  { %s883_s20 = smov 0   ;;  %s885_s21 = smov 0  }
   0x3   :  { %s887_s22 = smov 0   ;;  %s889_s23 = smov 0  }
   0x4 LB: > { %s630_s24 = sadd.s32 4294967295, %s844_s23   ;;  %s631_s25 = sadd.s32 4294967294, %s844_s23   ;;  %s844_s23 = sphi %s889_s23, %s18_s23   ;;  %s840_s22 = sphi %s887_s22, %s1030_s22   ;;  %s836_s21 = sphi %s885_s21, %s1029_s21   ;;  %s832_s20 = sphi %s883_s20, %s1028_s20   ;;  %s828_s19 = sphi %s881_s19, %s1027_s19   ;;  %s824_s18 = sphi %s879_s18, %s1026_s18  }
   0x5   : > { %s30_s26 = sadd.s32 1, %s840_s22  ;;  %s162_s27 = sadd.s32 1, %s832_s20 }
   0x6   : > { %p32_p0 = scmp.ge.s32.totalorder %s30_s26, 2  ;;  %p172_p1 = scmp.ne.s32.totalorder %s832_s20, %s828_s19 }
   0x7   : > { %p173_p2 = scmp.eq.s32.totalorder %s630_s24, 1  ;;  %p178_p3 = scmp.ne.s32.totalorder %s828_s19, %s824_s18 }
   0x8   : > { %s1032_s26 = smov (%p32_p0, %s30_s26), 0  ;;  %p179_p5 = scmp.eq.s32.totalorder %s631_s25, 1 }
   0x9   : > { %p919_p4 = por %p173_p2, %p172_p1  ;;  %s159_s29 = ssub.s32 %s840_s22, %s1032_s26 }
   0xa   : > { %p637_p6 = scmp.ge.s32.totalorder %s844_s23, 1  ;;  %p160_p7 = scmp.eq.s32.totalorder %s159_s29, 0 }
   0xb   : > { %p926_p8 = por %p179_p5, %p178_p3  ;;  %p229_p9 = scmp.lt.s32.totalorder %s844_s23, 3 }
   0xc   : > { %s932_s6 = scalar_select %p160_p7, %s832_s20, %s162_s27  }
   0xd   : > { %p230_p10 = pnand %p637_p6, %p229_p9 }
   0xe   : > { %p268_p11 = scmp.lt.s32.totalorder (!%p230_p10), %s836_s21, 1  ;;  %s265_s25 = sand.u32 (!%p230_p10), 1, %s828_s19  }
   0xf   : > { %233 = sbr.rel (%p230_p10) target bundleno = 495 (0x1ef), region = 40  ;;  %s638_s27 = sshll.u32 (!%p230_p10), %s265_s25, 3 }
  0x10   : > { %s654_s8 = sshll.u32 (!%p230_p10), %s836_s21, 7  ;;  %s267_s9 = scalar_lea.vmem (!%p230_p10), [#allocation3], %s638_s27 }
  0x11   : > { %s521_s10 = sshll.u32 (!%p230_p10), %s267_s9, 4  ;;  %s519_s13 = scalar_lea.hbm (!%p230_p10), %s1023_s5, %s654_s8  ;;  %s522_s10 = int_to_ptr.vmem [resolvable:$true] %s521_s10 }
  0x12   : > { %s508_s14 = scalar_lea.sflag (!%p230_p10), [#allocation4], %s265_s25  ;;  %s848_s16 = smov (!%p230_p10), [#allocation3]  }
  0x13   : > { %s772_s17 = sshll.u32 (!%p230_p10), %s848_s16, 4  ;;  %s773_s17 = int_to_ptr.vmem [resolvable:$false] %s772_s17 }
  0x14   : > { %v754_v0 = vld [vmem:[%s1019_s1 + $0x8] sm:$0xff]   ;;  %v846_v1 = vmov 0.0   ;;  %v755_v2 = vld [vmem:[%s1019_s1] sm:$0xff]   ;;  %vm847_vm0 = vmmov 0   ;;  %vm290_vm1 = vcmask 261120   ;;  %s269_s11 = scalar_select %p268_p11, %s836_s21, 1 }
  0x15   : > { %669 = vmatprep.subr.bf16.mxu0 %v846_v1  ;;  %677 = vmatprep.subr.bf16.mxu1 %v846_v1  ;;  %291 = vst.msk [vmem:[#allocation2] sm:$0xff] %vm290_vm1, %v846_v1  ;;  %v756_v4 = vld [vmem:[%s1021_s3 + $0x38] sm:$0xff]   ;;  %v757_v5 = vld [vmem:[%s1021_s3 + $0x30] sm:$0xff]   ;;  %v758_v6 = vld [vmem:[%s1021_s3 + $0x28] sm:$0xff]   ;;  %s774_s21 = scalar_lea.vmem %s773_s17, 256  ;;  %p775_p1 = scmp.lt.s32.totalorder %s522_s10, %s773_s17 }
  0x16   : > { %670 = vmatpush3.bf16.msra.mxu0 %v754_v0  ;;  %673 = vmatprep.mubr.msk.bf16.mxu0 %vm847_vm0, %v846_v1  ;;  %s639_s12 = sshll.u32 %s269_s11, 2  ;;  %v759_v7 = vld [vmem:[%s1021_s3 + $0x20] sm:$0xff]   ;;  %v760_v8 = vld [vmem:[%s1021_s3 + $0x18] sm:$0xff]   ;;  %v761_v9 = vld [vmem:[%s1021_s3 + $0x10] sm:$0xff]  }
  0x17   : > { %671 = vmatprep.subr.bf16.mxu0 %v846_v1  ;;  %693 = vmatprep.mubr.msk.bf16.mxu1 %vm847_vm0, %v846_v1  ;;  %s271_s15 = scalar_lea.vmem %s1018_s0, %s639_s12  ;;  %v762_v10 = vld [vmem:[%s1021_s3 + $0x8] sm:$0xff]   ;;  %v763_v11 = vld [vmem:[%s1021_s3] sm:$0xff]  }
  0x18   : > { %v292_v3 = vld [vmem:[%s271_s15] sm:$0xf]  ;;  %678 = vmatpush3.bf16.msra.mxu1 %v756_v4  ;;  %s768_s15 = scalar_lea.vmem %s522_s10, 128 }
  0x19   : > { %679 = vmatprep.subr.bf16.mxu1 %v846_v1  ;;  %v640_v12 = vld [vmem:[%s1020_s2] ss:$0 sm:$0xff]  ;;  %p769_p12 = scmp.ne.s32.totalorder %s522_s10, %s768_s15  ;;  %p776_p2 = scmp.lt.s32.totalorder %s774_s21, %s768_s15 }
  0x1a   : > { %672 = vmatpush3.bf16.msra.mxu0 %v755_v2  ;;  %v652_v50 = vld [vmem:[%s1022_s4] ss:$0 sm:$0xff] }
  0x1b   : > { %p770_p13 = pnand %p769_p12, %p919_p4  ;;  %p777_p3 = por %p776_p2, %p775_p1 }
  0x1c   : > { %680 = vmatpush3.bf16.msra.mxu1 %v757_v5  ;;  %v386_v44 = vld [vmem:[#allocation2] sm:$0xff] }
  0x1d   : > { %674 = vmatmul.mubr.msk.bf16.vlgmr.msra.gmra.mxu0 %vm290_vm1, %v292_v3  ;;  %681 = vmatprep.subr.bf16.mxu1 %v846_v1  ;;  %p771_p0 = pneg %p770_p13 }
  0x1f   : > { %p778_p5 = pnand %p777_p3, %p771_p0 }
  0x20   : > { %682 = vmatpush3.bf16.msra.mxu1 %v758_v6 }
  0x21   : > { %683 = vmatprep.subr.bf16.mxu1 %v846_v1 }
  0x24   : > { %684 = vmatpush3.bf16.msra.mxu1 %v759_v7 }
  0x25   : > { %685 = vmatprep.subr.bf16.mxu1 %v846_v1 }
  0x28   : > { %686 = vmatpush3.bf16.msra.mxu1 %v760_v8 }
  0x29   : > { %687 = vmatprep.subr.bf16.mxu1 %v846_v1 }
  0x2c   : > { %688 = vmatpush3.bf16.msra.mxu1 %v761_v9 }
  0x2d   : > { %689 = vmatprep.subr.bf16.mxu1 %v846_v1 }
  0x30   : > { %690 = vmatpush3.bf16.msra.mxu1 %v762_v10 }
  0x31   : > { %691 = vmatprep.subr.bf16.mxu1 %v846_v1 }
  0x34   : > { %692 = vmatpush3.bf16.msra.mxu1 %v763_v11 }
  0xdd   : > { %v354_v13 = vpop.f32.mrf.mxu0 }
  0xde   : > { %v355_v14 = vadd.f32 %v640_v12, %v354_v13 }
  0xdf   : > { %v675_v15 = vpop.f32.mrf.mxu0 }
  0xe0   : > { %v360_v16 = vmul.f32 0.70710677, %v355_v14  ;;  %v383_v40 = vmul.f32 0.5, %v355_v14 }
  0xe1   : > { %v357_v17 = vpop.f32.mrf.mxu0 }
  0xe2   : > { %v361_v18 = vand.u32 2147483647, %v360_v16  ;;  %vm380_vm2 = vcmp.ge.f32.partialorder %v360_v16, 0.0 }
  0xe3   : > { %v676_v19 = vpop.f32.mrf.mxu0 }
  0xe4   : > { %v362_v20 = vmul.f32 0.3275911, %v361_v18  ;;  %v374_v22 = vsub.f32 0.0, %v361_v18 }
  0xe6   : > { %v363_v21 = vadd.f32 1.0, %v362_v20  ;;  %v375_v23 = vmul.f32 %v374_v22, %v361_v18 }
  0xe8   : > { %764 = vrcp.f32 %v363_v21  ;;  %v376_v25 = vmul.f32 1.442695, %v375_v23 }
  0xea   : > { %766 = vpow2.f32 %v376_v25 }
  0xf5   : > { %v765_v24 = vpop.eup %764 }
  0xf6   : > { %v365_v26 = vmul.f32 1.0614054, %v765_v24 }
  0xf7   : > { %v767_v35 = vpop.eup %766 }
  0xf8   : > { %v366_v27 = vadd.f32 -1.4531521, %v365_v26 }
  0xfa   : > { %v367_v28 = vmul.f32 %v765_v24, %v366_v27 }
  0xfc   : > { %v368_v29 = vadd.f32 1.4214138, %v367_v28 }
  0xfe   : > { %v369_v30 = vmul.f32 %v765_v24, %v368_v29 }
 0x100   : > { %v370_v31 = vadd.f32 -0.28449672, %v369_v30 }
 0x102   : > { %v371_v32 = vmul.f32 %v765_v24, %v370_v31 }
 0x104   : > { %v372_v33 = vadd.f32 0.2548296, %v371_v32 }
 0x106   : > { %v373_v34 = vmul.f32 %v765_v24, %v372_v33 }
 0x108   : > { %v378_v36 = vmul.f32 %v767_v35, %v373_v34 }
 0x10a   : > { %v379_v37 = vsub.f32 1.0, %v378_v36 }
 0x10c   : > { %v381_v38 = vsub.f32 0.0, %v379_v37 }
 0x10e   : > { %v382_v39 = vsel %vm380_vm2, %v379_v37, %v381_v38 }
 0x10f   : > { %v384_v41 = vadd.f32 1.0, %v382_v39 }
 0x111   : > { %v385_v42 = vmul.f32 %v384_v41, %v383_v40 }
 0x113   : > { %v387_v43 = vpack.c.bf16 %v385_v42, %v385_v42 }
 0x115   : > { %694 = vmatmul.mubr.bf16.vlgmr.msra.gmra.mxu1 %v387_v43 }
 0x1d5   : > { %v486_v45 = vpop.f32.mrf.mxu1 }
 0x1d6   : > { %v492_v46 = vadd.f32 %v486_v45, %v386_v44 }
 0x1d7   : > { %v695_v47 = vpop.f32.mrf.mxu1 }
 0x1d8   : > { %493 = vst.msk [vmem:[#allocation2] sm:$0xff] %vm290_vm1, %v492_v46 }
 0x1d9   : > { %v489_v48 = vpop.f32.mrf.mxu1 }
 0x1db   : > { %v696_v49 = vpop.f32.mrf.mxu1 }
 0x1df   : > { %v497_v51 = vld [vmem:[#allocation2] sm:$0xff] }
 0x1e0   : > { %v505_v52 = vadd.f32 %v652_v50, %v497_v51 }
 0x1e2   : > { %506 = vst.msk [vmem:[%s267_s9] sm:$0xff] %vm290_vm1, %v505_v52 }
 0x1e3   : > { %781 = shalt.err (!%p778_p5)
}
 0x1e4   : > { %s782_s24 = scalar_lea.hbm %s519_s13, 128  ;;  %s786_s29 = scalar_lea.hbm %s1023_s5, 256 }
 0x1e5   : > { %p783_p6 = scmp.ne.s32.totalorder %s519_s13, %s782_s24  ;;  %p787_p10 = scmp.lt.s32.totalorder %s519_s13, %s1023_s5 }
 0x1e6   : > { %p788_p11 = scmp.lt.s32.totalorder %s786_s29, %s782_s24 }
 0x1e7   : > { %p784_p7 = pnand %p783_p6, %p919_p4 }
 0x1e8   : > { %p789_p12 = por %p788_p11, %p787_p10 }
 0x1e9   : > { %p785_p9 = pneg %p784_p7 }
 0x1eb   : > { %p790_p13 = pnand %p789_p12, %p785_p9 }
 0x1ed   : > { %793 = shalt.err (!%p790_p13)
}
 0x1ee   : > { %697 = dma.vmem_to_hbm [thread:$0]  (%p919_p4), %s522_s10, 128, %s519_s13, %s508_s14  }
 0x1ef PF: > { %p703_p0 = scmp.ge.s32.totalorder %s844_s23, 2  ;;  %s533_s9 = sand.u32 1, %s824_s18  }
 0x1f0   : > { %s534_s11 = scalar_lea.sflag [#allocation4], %s533_s9 }
 0x1f1   : > { %p700_p1 = pnand %p703_p0, %p926_p8 }
 0x1f3   : > { %p701_p2 = pneg %p700_p1 }
 0x1f5   : > { %819 = dma.done.wait (%p701_p2), %s534_s11, 128  }
 0x1f6   : > { %821 = vsyncadd (%p701_p2), %s534_s11, 4294967168  ;;  %s18_s23 = sadd.s32 1, %s844_s23   ;;  %s1026_s18 = smov %s828_s19 }
 0x1f7   : > { %p15_p3 = scmp.ge.s32.totalorder %s18_s23, 4   ;;  %s1027_s19 = smov %s832_s20 }
 0x1f8   : > { %s1028_s20 = smov %s932_s6  ;;  %s1029_s21 = smov %s840_s22 }
 0x1f9   : > { %s1030_s22 = smov %s1032_s26  ;;  %17 = sbr.rel (!%p15_p3) target bundleno = 4 (0x4), region = 92 }
 0x1fe   :  { %539 = vsyncpa [#allocation4], 1 }
 0x1ff   :  { %541 = vsyncpa [#allocation4 + $0x1], 1 }

</bundles_post_ra>
